<compile_context>
chip_gen: v7x
topology: tpu7x:2x2x1
jax: 0.10.0
libtpu: 0.0.40
codegen_flags: <defaults>
</compile_context>

<pallas_src>
import jax
import jax.numpy as jnp
from jax.experimental import pallas as pl
from jax.experimental.pallas import tpu as pltpu

IMAGE_DIM = 16
HIDDEN_DIM = IMAGE_DIM * IMAGE_DIM      # 256
NUM_POINTS = 16                         # input feature dim
VOCAB_SIZE = 5
NUM_LAYERS = 3

OUT_PAD = 128                           # lane-dense padded logits width (unmasked vst)
TM_LARGE = 512                          # rows per grid step for big batches
SMALL_BATCH_MAX = 512                   # up to this many 8-padded rows -> single tile


def _mlp_kernel(x_ref,
                w0_ref, b0_ref,
                w1_ref, b1_ref,
                w2_ref, b2_ref,
                wo_ref, bo_ref,
                o_ref):
    """Fused MLP forward for one (TM, NUM_POINTS) tile of rows.

    bf16 activations x bf16 weights -> single-pass MXU matmuls with f32
    accumulation; bias add and ReLU in f32.
    """
    h = x_ref[...].astype(jnp.bfloat16)

    h = jnp.dot(h, w0_ref[...], preferred_element_type=jnp.float32) + b0_ref[...]
    h = jnp.maximum(h, 0.0).astype(jnp.bfloat16)

    h = jnp.dot(h, w1_ref[...], preferred_element_type=jnp.float32) + b1_ref[...]
    h = jnp.maximum(h, 0.0).astype(jnp.bfloat16)

    h = jnp.dot(h, w2_ref[...], preferred_element_type=jnp.float32) + b2_ref[...]
    h = jnp.maximum(h, 0.0).astype(jnp.bfloat16)

    out = jnp.dot(h, wo_ref[...], preferred_element_type=jnp.float32) + bo_ref[...]
    o_ref[...] = out.astype(o_ref.dtype)   # (TM, OUT_PAD) bf16, lane-dense store


def _tile_plan(batch):
    """Static (per-shape) choice of (padded_batch, tile_rows)."""
    pad8 = pl.cdiv(batch, 8) * 8
    if pad8 <= SMALL_BATCH_MAX:
        # Small / ragged batch: single tile, only sublane (8-row) padding.
        return pad8, pad8
    # Large batch: 512-row tiles -> >= 2 grid steps, shardable across v7x's 2 TCs.
    padded = pl.cdiv(pad8, TM_LARGE) * TM_LARGE
    return padded, TM_LARGE


@jax.jit
def bravais_mlp_forward(x, params):
    """x: (batch, NUM_POINTS) f32.  params: output of prepare_kernel_params()."""
    batch = x.shape[0]
    padded_batch, tm = _tile_plan(batch)
    if padded_batch != batch:
        x = jnp.pad(x, ((0, padded_batch - batch), (0, 0)))

    (w0, b0), (w1, b1), (w2, b2), (wo, bo) = params
    grid = padded_batch // tm

    def resident(shape):
        # Constant index_map -> block re-used every grid step (stays VMEM-resident).
        return pl.BlockSpec(shape, lambda i: (0, 0))

    flops = 2 * padded_batch * (NUM_POINTS * HIDDEN_DIM
                                + (NUM_LAYERS - 1) * HIDDEN_DIM * HIDDEN_DIM
                                + HIDDEN_DIM * OUT_PAD)
    bytes_accessed = (x.size * 4                                    # f32 input
                      + (w0.size + w1.size + w2.size + wo.size) * 2  # bf16 weights
                      + (b0.size + b1.size + b2.size + bo.size) * 4  # f32 biases
                      + padded_batch * OUT_PAD * 2)                  # bf16 padded logits

    out_padded = pl.pallas_call(
        _mlp_kernel,
        out_shape=jax.ShapeDtypeStruct((padded_batch, OUT_PAD), jnp.bfloat16),
        grid=(grid,),
        in_specs=[
            pl.BlockSpec((tm, NUM_POINTS), lambda i: (i, 0)),   # x: batch-tiled
            resident(w0.shape), resident(b0.shape),
            resident(w1.shape), resident(b1.shape),
            resident(w2.shape), resident(b2.shape),
            resident(wo.shape), resident(bo.shape),
        ],
        out_specs=pl.BlockSpec((tm, OUT_PAD), lambda i: (i, 0)),
        compiler_params=pltpu.CompilerParams(
            dimension_semantics=("parallel",),   # batch tiles across TCs (v7x)
            vmem_limit_bytes=8 << 20,            # footprint ~1 MiB even at TM=512
        ),
        cost_estimate=pl.CostEstimate(flops=flops, transcendentals=0,
                                      bytes_accessed=bytes_accessed),
    )(x, w0, b0, w1, b1, w2, b2, wo, bo)

    # Slice off batch / head padding; return f32 logits like the PyTorch module.
    return out_padded[:batch, :VOCAB_SIZE].astype(jnp.float32)


def _init_params(key):
    """f32 parameters mirroring the PyTorch module (W stored as (in, out) = W_torch.T)."""
    params = []
    dims = ([(NUM_POINTS, HIDDEN_DIM)]
            + [(HIDDEN_DIM, HIDDEN_DIM)] * (NUM_LAYERS - 1)
            + [(HIDDEN_DIM, VOCAB_SIZE)])
    for d_in, d_out in dims:
        key, kw, kb = jax.random.split(key, 3)
        bound = 1.0 / (d_in ** 0.5)
        w = jax.random.uniform(kw, (d_in, d_out), jnp.float32, -bound, bound)
        b = jax.random.uniform(kb, (1, d_out), jnp.float32, -bound, bound)
        params.append((w, b))
    return params


def prepare_kernel_params(params):
    """One-time prep (outside the jitted forward): bf16 weights, head padded to OUT_PAD."""
    (w0, b0), (w1, b1), (w2, b2), (wo, bo) = params
    wo_p = jnp.pad(wo, ((0, 0), (0, OUT_PAD - VOCAB_SIZE)))
    bo_p = jnp.pad(bo, ((0, 0), (0, OUT_PAD - VOCAB_SIZE)))
    bf16 = lambda w: w.astype(jnp.bfloat16)
    return ((bf16(w0), b0), (bf16(w1), b1), (bf16(w2), b2), (bf16(wo_p), bo_p))


def _reference_forward(x, params):
    """Pure-JAX f32 reference matching the PyTorch forward."""
    h = x
    for (w, b) in params[:-1]:
        h = jnp.maximum(h @ w + b, 0.0)
    w, b = params[-1]
    return h @ w + b


if __name__ == "__main__":
    key = jax.random.PRNGKey(0)
    key, kx1, kx2, kx3 = jax.random.split(key, 4)

    params_f32 = _init_params(key)
    kparams = prepare_kernel_params(params_f32)   # hoisted out of the forward pass

    # Tolerances reflect bf16 weights + bf16 per-layer activations (f32 accumulate).
    ATOL, RTOL = 3e-2, 3e-2

    # 1) Small batch: single tile (TM = 64), no over-padding.
    x = jax.random.normal(kx1, (64, NUM_POINTS), jnp.float32)
    out = jax.block_until_ready(bravais_mlp_forward(x, kparams))
    ref = _reference_forward(x, params_f32)
    assert out.shape == (64, VOCAB_SIZE)
    assert jnp.allclose(out, ref, atol=ATOL, rtol=RTOL), "mismatch (batch=64)"

    # 2) Ragged batch: pads 9 -> 16 rows (not 128), exercises slice-back path.
    x_small = jax.random.normal(kx2, (9, NUM_POINTS), jnp.float32)
    out_small = jax.block_until_ready(bravais_mlp_forward(x_small, kparams))
    ref_small = _reference_forward(x_small, params_f32)
    assert out_small.shape == (9, VOCAB_SIZE)
    assert jnp.allclose(out_small, ref_small, atol=ATOL, rtol=RTOL), "mismatch (batch=9)"

    # 3) Larger batch: TM=512, grid=2 -> exercises the multi-tile / parallel path.
    x_big = jax.random.normal(kx3, (1024, NUM_POINTS), jnp.float32)
    out_big = jax.block_until_ready(bravais_mlp_forward(x_big, kparams))
    ref_big = _reference_forward(x_big, params_f32)
    assert out_big.shape == (1024, VOCAB_SIZE)
    assert jnp.allclose(out_big, ref_big, atol=ATOL, rtol=RTOL), "mismatch (batch=1024)"

    print("KERNEL_OK")
</pallas_src>

<mosaic_0001>
module attributes {stable_mosaic.version = 11 : i64} {
  func.func @_mlp_kernel(%arg0: i32, %arg1: memref<64x16xf32, #tpu.memory_space<vmem>>, %arg2: memref<16x256xbf16, #tpu.memory_space<vmem>>, %arg3: memref<1x256xf32, #tpu.memory_space<vmem>>, %arg4: memref<256x256xbf16, #tpu.memory_space<vmem>>, %arg5: memref<1x256xf32, #tpu.memory_space<vmem>>, %arg6: memref<256x256xbf16, #tpu.memory_space<vmem>>, %arg7: memref<1x256xf32, #tpu.memory_space<vmem>>, %arg8: memref<256x128xbf16, #tpu.memory_space<vmem>>, %arg9: memref<1x128xf32, #tpu.memory_space<vmem>>, %arg10: memref<64x128xbf16, #tpu.memory_space<vmem>>) attributes {dimension_semantics = [#tpu.dimension_semantics<parallel>], iteration_bounds = array<i64: 1>, scalar_prefetch = 0 : i64, scratch_operands = 0 : i64, tpu.core_type = #tpu.core_type<tc>, window_params = [{transform_indices = @transform_0, window_bounds = array<i64: 64, 16>}, {pipeline_mode = #tpu.pipeline_mode<synchronous>, transform_indices = @transform_1, window_bounds = array<i64: 16, 256>}, {pipeline_mode = #tpu.pipeline_mode<synchronous>, transform_indices = @transform_2, window_bounds = array<i64: 1, 256>}, {pipeline_mode = #tpu.pipeline_mode<synchronous>, transform_indices = @transform_3, window_bounds = array<i64: 256, 256>}, {pipeline_mode = #tpu.pipeline_mode<synchronous>, transform_indices = @transform_4, window_bounds = array<i64: 1, 256>}, {pipeline_mode = #tpu.pipeline_mode<synchronous>, transform_indices = @transform_5, window_bounds = array<i64: 256, 256>}, {pipeline_mode = #tpu.pipeline_mode<synchronous>, transform_indices = @transform_6, window_bounds = array<i64: 1, 256>}, {pipeline_mode = #tpu.pipeline_mode<synchronous>, transform_indices = @transform_7, window_bounds = array<i64: 256, 128>}, {pipeline_mode = #tpu.pipeline_mode<synchronous>, transform_indices = @transform_8, window_bounds = array<i64: 1, 128>}, {transform_indices = @transform_9, window_bounds = array<i64: 64, 128>}]} {
    %c0 = arith.constant 0 : index
    %c0_0 = arith.constant 0 : index
    %0 = vector.load %arg1[%c0, %c0_0] : memref<64x16xf32, #tpu.memory_space<vmem>>, vector<64x16xf32>
    %1 = arith.truncf %0 : vector<64x16xf32> to vector<64x16xbf16>
    %c0_1 = arith.constant 0 : index
    %c0_2 = arith.constant 0 : index
    %2 = vector.load %arg2[%c0_1, %c0_2] : memref<16x256xbf16, #tpu.memory_space<vmem>>, vector<16x256xbf16>
    %cst = arith.constant dense<0.000000e+00> : vector<64x256xf32>
    %3 = tpu.matmul %1, %2, %cst {dimension_numbers = #tpu.dot_dimension_numbers<[1], [0], [0], [1], [0, 0, 1, 1], [], []>} : vector<64x16xbf16>, vector<16x256xbf16>, vector<64x256xf32> -> vector<64x256xf32>
    %c0_3 = arith.constant 0 : index
    %c0_4 = arith.constant 0 : index
    %4 = vector.load %arg3[%c0_3, %c0_4] : memref<1x256xf32, #tpu.memory_space<vmem>>, vector<1x256xf32>
    %5 = vector.broadcast %4 : vector<1x256xf32> to vector<64x256xf32>
    %6 = arith.addf %3, %5 : vector<64x256xf32>
    %cst_5 = arith.constant 0.000000e+00 : f32
    %7 = vector.broadcast %cst_5 : f32 to vector<64x256xf32>
    %8 = arith.maximumf %6, %7 : vector<64x256xf32>
    %9 = arith.truncf %8 : vector<64x256xf32> to vector<64x256xbf16>
    %c0_6 = arith.constant 0 : index
    %c0_7 = arith.constant 0 : index
    %10 = vector.load %arg4[%c0_6, %c0_7] : memref<256x256xbf16, #tpu.memory_space<vmem>>, vector<256x256xbf16>
    %cst_8 = arith.constant dense<0.000000e+00> : vector<64x256xf32>
    %11 = tpu.matmul %9, %10, %cst_8 {dimension_numbers = #tpu.dot_dimension_numbers<[1], [0], [0], [1], [0, 0, 1, 1], [], []>} : vector<64x256xbf16>, vector<256x256xbf16>, vector<64x256xf32> -> vector<64x256xf32>
    %c0_9 = arith.constant 0 : index
    %c0_10 = arith.constant 0 : index
    %12 = vector.load %arg5[%c0_9, %c0_10] : memref<1x256xf32, #tpu.memory_space<vmem>>, vector<1x256xf32>
    %13 = vector.broadcast %12 : vector<1x256xf32> to vector<64x256xf32>
    %14 = arith.addf %11, %13 : vector<64x256xf32>
    %cst_11 = arith.constant 0.000000e+00 : f32
    %15 = vector.broadcast %cst_11 : f32 to vector<64x256xf32>
    %16 = arith.maximumf %14, %15 : vector<64x256xf32>
    %17 = arith.truncf %16 : vector<64x256xf32> to vector<64x256xbf16>
    %c0_12 = arith.constant 0 : index
    %c0_13 = arith.constant 0 : index
    %18 = vector.load %arg6[%c0_12, %c0_13] : memref<256x256xbf16, #tpu.memory_space<vmem>>, vector<256x256xbf16>
    %cst_14 = arith.constant dense<0.000000e+00> : vector<64x256xf32>
    %19 = tpu.matmul %17, %18, %cst_14 {dimension_numbers = #tpu.dot_dimension_numbers<[1], [0], [0], [1], [0, 0, 1, 1], [], []>} : vector<64x256xbf16>, vector<256x256xbf16>, vector<64x256xf32> -> vector<64x256xf32>
    %c0_15 = arith.constant 0 : index
    %c0_16 = arith.constant 0 : index
    %20 = vector.load %arg7[%c0_15, %c0_16] : memref<1x256xf32, #tpu.memory_space<vmem>>, vector<1x256xf32>
    %21 = vector.broadcast %20 : vector<1x256xf32> to vector<64x256xf32>
    %22 = arith.addf %19, %21 : vector<64x256xf32>
    %cst_17 = arith.constant 0.000000e+00 : f32
    %23 = vector.broadcast %cst_17 : f32 to vector<64x256xf32>
    %24 = arith.maximumf %22, %23 : vector<64x256xf32>
    %25 = arith.truncf %24 : vector<64x256xf32> to vector<64x256xbf16>
    %c0_18 = arith.constant 0 : index
    %c0_19 = arith.constant 0 : index
    %26 = vector.load %arg8[%c0_18, %c0_19] : memref<256x128xbf16, #tpu.memory_space<vmem>>, vector<256x128xbf16>
    %cst_20 = arith.constant dense<0.000000e+00> : vector<64x128xf32>
    %27 = tpu.matmul %25, %26, %cst_20 {dimension_numbers = #tpu.dot_dimension_numbers<[1], [0], [0], [1], [0, 0, 1, 1], [], []>} : vector<64x256xbf16>, vector<256x128xbf16>, vector<64x128xf32> -> vector<64x128xf32>
    %c0_21 = arith.constant 0 : index
    %c0_22 = arith.constant 0 : index
    %28 = vector.load %arg9[%c0_21, %c0_22] : memref<1x128xf32, #tpu.memory_space<vmem>>, vector<1x128xf32>
    %29 = vector.broadcast %28 : vector<1x128xf32> to vector<64x128xf32>
    %30 = arith.addf %27, %29 : vector<64x128xf32>
    %31 = arith.truncf %30 : vector<64x128xf32> to vector<64x128xbf16>
    %c0_23 = arith.constant 0 : index
    %c0_24 = arith.constant 0 : index
    %32 = vector.load %arg10[%c0_23, %c0_24] : memref<64x128xbf16, #tpu.memory_space<vmem>>, vector<64x128xbf16>
    tpu.vector_store %arg10[%c0_23, %c0_24], %31 {strides = array<i32>} : memref<64x128xbf16, #tpu.memory_space<vmem>>, vector<64x128xbf16>,
    return
  }
  func.func @transform_0(%arg0: i32) -> (i32, i32) {
    %c0_i32 = arith.constant 0 : i32
    %c0_i32_0 = arith.constant 0 : i32
    return %arg0, %c0_i32 : i32, i32
  }
  func.func @transform_1(%arg0: i32) -> (i32, i32) {
    %c0_i32 = arith.constant 0 : i32
    %c0_i32_0 = arith.constant 0 : i32
    %c0_i32_1 = arith.constant 0 : i32
    return %c0_i32, %c0_i32_0 : i32, i32
  }
  func.func @transform_2(%arg0: i32) -> (i32, i32) {
    %c0_i32 = arith.constant 0 : i32
    %c0_i32_0 = arith.constant 0 : i32
    %c0_i32_1 = arith.constant 0 : i32
    return %c0_i32, %c0_i32_0 : i32, i32
  }
  func.func @transform_3(%arg0: i32) -> (i32, i32) {
    %c0_i32 = arith.constant 0 : i32
    %c0_i32_0 = arith.constant 0 : i32
    %c0_i32_1 = arith.constant 0 : i32
    return %c0_i32, %c0_i32_0 : i32, i32
  }
  func.func @transform_4(%arg0: i32) -> (i32, i32) {
    %c0_i32 = arith.constant 0 : i32
    %c0_i32_0 = arith.constant 0 : i32
    %c0_i32_1 = arith.constant 0 : i32
    return %c0_i32, %c0_i32_0 : i32, i32
  }
  func.func @transform_5(%arg0: i32) -> (i32, i32) {
    %c0_i32 = arith.constant 0 : i32
    %c0_i32_0 = arith.constant 0 : i32
    %c0_i32_1 = arith.constant 0 : i32
    return %c0_i32, %c0_i32_0 : i32, i32
  }
  func.func @transform_6(%arg0: i32) -> (i32, i32) {
    %c0_i32 = arith.constant 0 : i32
    %c0_i32_0 = arith.constant 0 : i32
    %c0_i32_1 = arith.constant 0 : i32
    return %c0_i32, %c0_i32_0 : i32, i32
  }
  func.func @transform_7(%arg0: i32) -> (i32, i32) {
    %c0_i32 = arith.constant 0 : i32
    %c0_i32_0 = arith.constant 0 : i32
    %c0_i32_1 = arith.constant 0 : i32
    return %c0_i32, %c0_i32_0 : i32, i32
  }
  func.func @transform_8(%arg0: i32) -> (i32, i32) {
    %c0_i32 = arith.constant 0 : i32
    %c0_i32_0 = arith.constant 0 : i32
    %c0_i32_1 = arith.constant 0 : i32
    return %c0_i32, %c0_i32_0 : i32, i32
  }
  func.func @transform_9(%arg0: i32) -> (i32, i32) {
    %c0_i32 = arith.constant 0 : i32
    %c0_i32_0 = arith.constant 0 : i32
    return %arg0, %c0_i32 : i32, i32
  }
}

</mosaic_0001>

<bundles_post_ra>
// kernel: bravais_mlp_forward.1
= control target key start
LH: loop header
LB: loop body
LE: loop exit
PB: predicated region body
PF: predicated region fallthrough
CT: control target
= control target key end

     0   :  { %14 = vsyncpa [#allocation3], 0  ;;  %s1638_s0 = inlined_call_operand.vmem [shape: f32[64,16], index: 0, kind: input, shape index: {}]   ;;  %s1639_s1 = inlined_call_operand.vmem [shape: bf16[16,256], index: 1, kind: input, shape index: {}]   ;;  %s1640_s2 = inlined_call_operand.vmem [shape: f32[1,256], index: 2, kind: input, shape index: {}]   ;;  %s1641_s3 = inlined_call_operand.hbm [shape: bf16[256,256], index: 3, kind: input, shape index: {}]   ;;  %s1642_s4 = inlined_call_operand.vmem [shape: f32[1,256], index: 4, kind: input, shape index: {}]   ;;  %s1643_s5 = inlined_call_operand.hbm [shape: bf16[256,256], index: 5, kind: input, shape index: {}]   ;;  %s1644_s6 = inlined_call_operand.vmem [shape: f32[1,256], index: 6, kind: input, shape index: {}]   ;;  %s1645_s7 = inlined_call_operand.hbm [shape: bf16[256,128], index: 7, kind: input, shape index: {}]   ;;  %s1646_s8 = inlined_call_operand.vmem [shape: f32[1,128], index: 8, kind: input, shape index: {}]   ;;  %s1647_s9 = inlined_call_operand.vmem [shape: bf16[64,128], index: 9, kind: output, shape index: {}]  }
   0x1   :  { %15 = vsyncpa [#allocation5], 0  ;;  %s1443_s30 = smov [#allocation4]   ;;  %s1444_s11 = smov [#allocation2]  }
   0x2   :  { %s41_s10 = sshll.u32 %s1443_s30, 4  ;;  %s27_s12 = sshll.u32 %s1444_s11, 4  ;;  %s42_s10 = int_to_ptr.vmem [resolvable:$true] %s41_s10  ;;  %s1501_s12 = int_to_ptr.vmem [resolvable:$true] %s27_s12 }
   0x3   :  { %s1373_s15 = scalar_lea.hbm %s1643_s5, 4096 }
   0x4   :  { %p1374_p0 = scmp.ne.s32.totalorder %s1643_s5, %s1373_s15  ;;  %p1377_p1 = scmp.lt.u32.totalorder %s1373_s15, %s1643_s5 }
   0x6   :  { %p1379_p2 = pnand %p1377_p1, %p1374_p0 }
   0x8   :  { %1382 = shalt.err (!%p1379_p2)
}
   0x9   :  { %s1383_s20 = scalar_lea.vmem %s42_s10, 4096  ;;  %p1388_p4 = scmp.lt.s32.totalorder %s42_s10, %s42_s10 }
   0xa   :  { %p1384_p3 = scmp.ne.s32.totalorder %s42_s10, %s1383_s20  ;;  %p1389_p5 = scmp.lt.s32.totalorder %s1383_s20, %s1383_s20 }
   0xc   :  { %p1390_p6 = por %p1389_p5, %p1388_p4 }
   0xe   :  { %p1391_p7 = pnand %p1390_p6, %p1384_p3 }
  0x10   :  { %1394 = shalt.err (!%p1391_p7)
}
  0x11   :  { %s1445_s21 = smov 128   ;;  %s1446_s22 = smov 8  }
  0x12   :  { %47 = dma.hbm_to_vmem [thread:$0]  %s1643_s5, 4096, %s42_s10, [#allocation5], %s1445_s21, %s1445_s21, %s1446_s22  }
  0x13   :  { %s1395_s27 = scalar_lea.hbm %s1641_s3, 4096 }
  0x14   :  { %p1396_p8 = scmp.ne.s32.totalorder %s1641_s3, %s1395_s27  ;;  %p1399_p9 = scmp.lt.u32.totalorder %s1395_s27, %s1641_s3 }
  0x16   :  { %p1401_p10 = pnand %p1399_p9, %p1396_p8 }
  0x18   :  { %1404 = shalt.err (!%p1401_p10)
}
  0x19   :  { %s1405_s13 = scalar_lea.vmem %s1501_s12, 4096  ;;  %p1410_p12 = scmp.lt.s32.totalorder %s1501_s12, %s1501_s12 }
  0x1a   :  { %p1406_p11 = scmp.ne.s32.totalorder %s1501_s12, %s1405_s13  ;;  %p1411_p13 = scmp.lt.s32.totalorder %s1405_s13, %s1405_s13 }
  0x1c   :  { %p1412_p0 = por %p1411_p13, %p1410_p12 }
  0x1e   :  { %p1413_p1 = pnand %p1412_p0, %p1406_p11 }
  0x20   :  { %1416 = shalt.err (!%p1413_p1)
}
  0x21   :  { %33 = dma.hbm_to_vmem [thread:$0]  %s1641_s3, 4096, %s1501_s12, [#allocation3], %s1445_s21, %s1445_s21, %s1446_s22  }
  0x22   :  { %s1447_s14 = smov [#allocation6]   ;;  %s1417_s18 = scalar_lea.hbm %s1645_s7, 2048 }
  0x23   :  { %s55_s15 = sshll.u32 %s1447_s14, 4  ;;  %p1418_p2 = scmp.ne.s32.totalorder %s1645_s7, %s1417_s18  ;;  %s56_s15 = int_to_ptr.vmem [resolvable:$true] %s55_s15 }
  0x24   :  { %p1421_p3 = scmp.lt.u32.totalorder %s1417_s18, %s1645_s7 }
  0x26   :  { %p1423_p4 = pnand %p1421_p3, %p1418_p2 }
  0x28   :  { %1426 = shalt.err (!%p1423_p4)
}
  0x29   :  { %s1427_s25 = scalar_lea.vmem %s56_s15, 2048  ;;  %p1432_p6 = scmp.lt.s32.totalorder %s56_s15, %s56_s15 }
  0x2a   :  { %p1428_p5 = scmp.ne.s32.totalorder %s56_s15, %s1427_s25  ;;  %p1433_p7 = scmp.lt.s32.totalorder %s1427_s25, %s1427_s25 }
  0x2c   :  { %p1434_p8 = por %p1433_p7, %p1432_p6 }
  0x2e   :  { %p1435_p9 = pnand %p1434_p8, %p1428_p5 }
  0x30   :  { %1438 = shalt.err (!%p1435_p9)
}
  0x31   :  { %s1448_s3 = smov 64   ;;  %s1449_s12 = smov 4  }
  0x32   :  { %61 = dma.hbm_to_vmem [thread:$0]  %s1645_s7, 2048, %s56_s15, [#allocation5], %s1448_s3, %s1448_s3, %s1449_s12  }
  0x33   :  { %1439 = dma.done.wait [#allocation3], 4096  }
  0x34   :  { %1440 = vsyncadd [#allocation3], 4294963200 }
  0x35   :  { %1441 = dma.done.wait [#allocation5], 6144  }
  0x36   :  { %1442 = vsyncadd [#allocation5], 4294961152  ;;  %v1450_v0 = vmov 0   ;;  %v1258_v1 = vld [vmem:[%s1639_s1 + $0x4] ss:$8 sps:$4 sm:$0xff]   ;;  %vm110_vm0 = vcmask 130048  }
  0x37   :  { %155 = vmatprep.mubr.bf16.mxu0 %v1450_v0  ;;  %v1260_v2 = vld [vmem:[%s1639_s1] ss:$8 sps:$4 sm:$0xff]   ;;  %123 = vmatprep.subr.bf16.mxu0 %v1258_v1  ;;  %v1261_v6 = vld [vmem:[#allocation2 + $0x4] ss:$8 sps:$4 sm:$0xff]   ;;  %v76_v8 = vld [vmem:[%s1638_s0 + $0x10] sm:$0xff] }
  0x38   :  { %v74_v3 = vld [vmem:[%s1638_s0] sm:$0xff]  ;;  %v75_v4 = vld [vmem:[%s1638_s0 + $0x8] sm:$0xff]  ;;  %124 = vmatpush1.bf16.msra.mxu0 %v1260_v2  ;;  %424 = vmatprep.subr.bf16.mxu1 %v1261_v6  ;;  %v1264_v9 = vld [vmem:[#allocation2 + $0x14] ss:$8 sps:$4 sm:$0xff]  }
  0x39   :  { %v82_v5 = vpack.c.bf16 %v75_v4, %v74_v3  ;;  %v1263_v7 = vld [vmem:[#allocation2] ss:$8 sps:$4 sm:$0xff]   ;;  %v77_v10 = vld [vmem:[%s1638_s0 + $0x18] sm:$0xff]  ;;  %v1267_v12 = vld [vmem:[#allocation2 + $0x24] ss:$8 sps:$4 sm:$0xff]  }
  0x3a   :  { %425 = vmatpush1.bf16.msra.mxu1 %v1263_v7  ;;  %v1266_v11 = vld [vmem:[#allocation2 + $0x10] ss:$8 sps:$4 sm:$0xff]   ;;  %v83_v13 = vpack.c.bf16 %v77_v10, %v76_v8  ;;  %v1269_v14 = vld [vmem:[#allocation2 + $0x20] ss:$8 sps:$4 sm:$0xff]   ;;  %v1270_v15 = vld [vmem:[#allocation2 + $0x34] ss:$8 sps:$4 sm:$0xff]  }
  0x3b   :  { %1070 = vmatmul.mubr.msk.bf16.vlgmr.msra.gmra.mrb[0].mxu0 %vm110_vm0, %v82_v5  ;;  %426 = vmatprep.subr.bf16.mxu1 %v1264_v9  ;;  %v78_v16 = vld [vmem:[%s1638_s0 + $0x20] sm:$0xff]  ;;  %v79_v17 = vld [vmem:[%s1638_s0 + $0x28] sm:$0xff]  ;;  %v1272_v18 = vld [vmem:[#allocation2 + $0x30] ss:$8 sps:$4 sm:$0xff]  }
  0x3c   :  { %165 = vmatprep.mubr.bf16.mxu0 %v1450_v0  ;;  %v1273_v19 = vld [vmem:[#allocation2 + $0x44] ss:$8 sps:$4 sm:$0xff]   ;;  %v84_v20 = vpack.c.bf16 %v79_v17, %v78_v16  ;;  %v1275_v21 = vld [vmem:[#allocation2 + $0x40] ss:$8 sps:$4 sm:$0xff]   ;;  %v1276_v22 = vld [vmem:[#allocation2 + $0x54] ss:$8 sps:$4 sm:$0xff]  }
  0x3d   :  { %v80_v23 = vld [vmem:[%s1638_s0 + $0x30] sm:$0xff]  ;;  %v81_v24 = vld [vmem:[%s1638_s0 + $0x38] sm:$0xff]  ;;  %v1279_v26 = vld [vmem:[#allocation2 + $0x64] ss:$8 sps:$4 sm:$0xff]  }
  0x3e   :  { %427 = vmatpush1.bf16.msra.mxu1 %v1266_v11  ;;  %v1278_v25 = vld [vmem:[#allocation2 + $0x50] ss:$8 sps:$4 sm:$0xff]   ;;  %v1281_v27 = vld [vmem:[#allocation2 + $0x60] ss:$8 sps:$4 sm:$0xff]   ;;  %v85_v28 = vpack.c.bf16 %v81_v24, %v80_v23  ;;  %v1282_v29 = vld [vmem:[#allocation2 + $0x74] ss:$8 sps:$4 sm:$0xff]   ;;  %v90_v11 = vlaneseq }
  0x3f   :  { %428 = vmatprep.subr.bf16.mxu1 %v1267_v12  ;;  %v1284_v30 = vld [vmem:[#allocation2 + $0x70] ss:$8 sps:$4 sm:$0xff]   ;;  %v1285_v31 = vld [vmem:[#allocation2 + $0x84] ss:$8 sps:$4 sm:$0xff]   ;;  %v1287_v32 = vld [vmem:[#allocation2 + $0x80] ss:$8 sps:$4 sm:$0xff]  }
  0x40   :  { %v1288_v33 = vld [vmem:[#allocation2 + $0x94] ss:$8 sps:$4 sm:$0xff]   ;;  %v1290_v34 = vld [vmem:[#allocation2 + $0x90] ss:$8 sps:$4 sm:$0xff]   ;;  %v1291_v35 = vld [vmem:[#allocation2 + $0xa4] ss:$8 sps:$4 sm:$0xff]  }
  0x41   :  { %v1293_v36 = vld [vmem:[#allocation2 + $0xa0] ss:$8 sps:$4 sm:$0xff]   ;;  %v1294_v37 = vld [vmem:[#allocation2 + $0xb4] ss:$8 sps:$4 sm:$0xff]   ;;  %v1296_v38 = vld [vmem:[#allocation2 + $0xb0] ss:$8 sps:$4 sm:$0xff]  }
  0x42   :  { %429 = vmatpush1.bf16.msra.mxu1 %v1269_v14  ;;  %v1297_v39 = vld [vmem:[#allocation2 + $0xc4] ss:$8 sps:$4 sm:$0xff]   ;;  %v1299_v40 = vld [vmem:[#allocation2 + $0xc0] ss:$8 sps:$4 sm:$0xff]   ;;  %v1300_v41 = vld [vmem:[#allocation2 + $0xd4] ss:$8 sps:$4 sm:$0xff]  }
  0x43   :  { %1071 = vmatmul.mubr.msk.bf16.gmra.mrb[4].mxu0 %vm110_vm0, %v83_v13  ;;  %430 = vmatprep.subr.bf16.mxu1 %v1270_v15  ;;  %v1302_v42 = vld [vmem:[#allocation2 + $0xd0] ss:$8 sps:$4 sm:$0xff]   ;;  %v1303_v43 = vld [vmem:[#allocation2 + $0xe4] ss:$8 sps:$4 sm:$0xff]   ;;  %v1305_v44 = vld [vmem:[#allocation2 + $0xe0] ss:$8 sps:$4 sm:$0xff]  }
  0x44   :  { %175 = vmatprep.mubr.bf16.mxu0 %v1450_v0  ;;  %v1306_v45 = vld [vmem:[#allocation2 + $0xf4] ss:$8 sps:$4 sm:$0xff]   ;;  %v1308_v46 = vld [vmem:[#allocation2 + $0xf0] ss:$8 sps:$4 sm:$0xff]   ;;  %v1309_v47 = vld [vmem:[#allocation4] ss:$8 sps:$4 sm:$0xff]  }
  0x45   :  { %v1311_v48 = vld [vmem:[#allocation4 + $0x4] ss:$8 sps:$4 sm:$0xff]   ;;  %v1314_v49 = vld [vmem:[#allocation4 + $0x14] ss:$8 sps:$4 sm:$0xff]   ;;  %v1312_v50 = vld [vmem:[#allocation4 + $0x10] ss:$8 sps:$4 sm:$0xff]  }
  0x46   :  { %431 = vmatpush1.bf16.msra.mxu1 %v1272_v18  ;;  %725 = vmatprep.subr.bf16.mxu0 %v1311_v48  ;;  %v1317_v51 = vld [vmem:[#allocation4 + $0x24] ss:$8 sps:$4 sm:$0xff]   ;;  %v1315_v52 = vld [vmem:[#allocation4 + $0x20] ss:$8 sps:$4 sm:$0xff]   ;;  %v1320_v53 = vld [vmem:[#allocation4 + $0x34] ss:$8 sps:$4 sm:$0xff]  }
  0x47   :  { %432 = vmatprep.subr.bf16.mxu1 %v1273_v19  ;;  %726 = vmatpush1.bf16.msra.mxu0 %v1309_v47  ;;  %v1318_v54 = vld [vmem:[#allocation4 + $0x30] ss:$8 sps:$4 sm:$0xff]   ;;  %v1323_v55 = vld [vmem:[#allocation4 + $0x44] ss:$8 sps:$4 sm:$0xff]   ;;  %v1321_v56 = vld [vmem:[#allocation4 + $0x40] ss:$8 sps:$4 sm:$0xff]  }
  0x48   :  { %727 = vmatprep.subr.bf16.mxu0 %v1314_v49  ;;  %v1326_v57 = vld [vmem:[#allocation4 + $0x54] ss:$8 sps:$4 sm:$0xff]   ;;  %v1324_v58 = vld [vmem:[#allocation4 + $0x50] ss:$8 sps:$4 sm:$0xff]   ;;  %v1329_v59 = vld [vmem:[#allocation4 + $0x64] ss:$8 sps:$4 sm:$0xff]  }
  0x49   :  { %v1327_v60 = vld [vmem:[#allocation4 + $0x60] ss:$8 sps:$4 sm:$0xff]   ;;  %v1332_v61 = vld [vmem:[#allocation4 + $0x74] ss:$8 sps:$4 sm:$0xff]   ;;  %v1330_v62 = vld [vmem:[#allocation4 + $0x70] ss:$8 sps:$4 sm:$0xff]  }
  0x4a   :  { %433 = vmatpush1.bf16.msra.mxu1 %v1275_v21  ;;  %v1335_v63 = vld [vmem:[#allocation4 + $0x84] ss:$8 sps:$4 sm:$0xff]   ;;  %v1338_v1 = vld [vmem:[#allocation4 + $0x94] ss:$8 sps:$4 sm:$0xff]   ;;  %v1336_v2 = vld [vmem:[#allocation4 + $0x90] ss:$8 sps:$4 sm:$0xff]  }
  0x4b   :  { %1072 = vmatmul.mubr.msk.bf16.gmra.mrb[8].mxu0 %vm110_vm0, %v84_v20  ;;  %434 = vmatprep.subr.bf16.mxu1 %v1276_v22  ;;  %v1341_v3 = vld [vmem:[#allocation4 + $0xa4] ss:$8 sps:$4 sm:$0xff]   ;;  %v1339_v4 = vld [vmem:[#allocation4 + $0xa0] ss:$8 sps:$4 sm:$0xff]   ;;  %v1344_v5 = vld [vmem:[#allocation4 + $0xb4] ss:$8 sps:$4 sm:$0xff]  }
  0x4c   :  { %185 = vmatprep.mubr.bf16.mxu0 %v1450_v0  ;;  %728 = vmatpush1.bf16.msra.mxu0 %v1312_v50  ;;  %v1333_v0 = vld [vmem:[#allocation4 + $0x80] ss:$8 sps:$4 sm:$0xff]   ;;  %v1342_v6 = vld [vmem:[#allocation4 + $0xb0] ss:$8 sps:$4 sm:$0xff]   ;;  %v1347_v7 = vld [vmem:[#allocation4 + $0xc4] ss:$8 sps:$4 sm:$0xff]  }
  0x4d   :  { %729 = vmatprep.subr.bf16.mxu0 %v1317_v51  ;;  %v1345_v8 = vld [vmem:[#allocation4 + $0xc0] ss:$8 sps:$4 sm:$0xff]   ;;  %v1350_v9 = vld [vmem:[#allocation4 + $0xd4] ss:$8 sps:$4 sm:$0xff]   ;;  %v1348_v10 = vld [vmem:[#allocation4 + $0xd0] ss:$8 sps:$4 sm:$0xff]  }
  0x4e   :  { %435 = vmatpush1.bf16.msra.mxu1 %v1278_v25  ;;  %v91_v12 = vshrl.u32 %v90_v11, 7  ;;  %v88_v14 = vld [vmem:[%s1640_s2] sm:$0x3] }
  0x4f   :  { %436 = vmatprep.subr.bf16.mxu1 %v1279_v26  ;;  %v1351_v11 = vld [vmem:[#allocation4 + $0xe0] ss:$8 sps:$4 sm:$0xff]  }
  0x50   :  { %730 = vmatpush1.bf16.msra.mxu0 %v1315_v52  ;;  %v1578_v13 = vsub.s32 0, %v91_v12  ;;  %v1583_v15 = vsub.s32 1, %v91_v12  ;;  %v1356_v12 = vld [vmem:[#allocation4 + $0xf4] ss:$8 sps:$4 sm:$0xff]  }
  0x51   :  { %731 = vmatprep.subr.bf16.mxu0 %v1320_v53 }
  0x52   :  { %437 = vmatpush1.bf16.msra.mxu1 %v1281_v27  ;;  %v93_v16 = vrot.slane %v88_v14, %v1578_v13  ;;  %v97_v17 = vrot.slane %v88_v14, %v1583_v15  ;;  %v1354_v14 = vld [vmem:[#allocation4 + $0xf0] ss:$8 sps:$4 sm:$0xff]  }
  0x53   :  { %1073 = vmatmul.mubr.msk.bf16.gmra.mrb[12].mxu0 %vm110_vm0, %v85_v28  ;;  %438 = vmatprep.subr.bf16.mxu1 %v1282_v29 }
  0x54   :  { %732 = vmatpush1.bf16.msra.mxu0 %v1318_v54 }
  0x55   :  { %733 = vmatprep.subr.bf16.mxu0 %v1323_v55 }
  0x56   :  { %439 = vmatpush1.bf16.msra.mxu1 %v1284_v30 }
  0x57   :  { %440 = vmatprep.subr.bf16.mxu1 %v1285_v31 }
  0x58   :  { %734 = vmatpush1.bf16.msra.mxu0 %v1321_v56 }
  0x59   :  { %735 = vmatprep.subr.bf16.mxu0 %v1326_v57 }
  0x5a   :  { %441 = vmatpush1.bf16.msra.mxu1 %v1287_v32 }
  0x5b   :  { %442 = vmatprep.subr.bf16.mxu1 %v1288_v33 }
  0x5c   :  { %736 = vmatpush1.bf16.msra.mxu0 %v1324_v58 }
  0x5d   :  { %737 = vmatprep.subr.bf16.mxu0 %v1329_v59 }
  0x5e   :  { %443 = vmatpush1.bf16.msra.mxu1 %v1290_v34 }
  0x5f   :  { %444 = vmatprep.subr.bf16.mxu1 %v1291_v35 }
  0x60   :  { %738 = vmatpush1.bf16.msra.mxu0 %v1327_v60 }
  0x61   :  { %739 = vmatprep.subr.bf16.mxu0 %v1332_v61 }
  0x62   :  { %445 = vmatpush1.bf16.msra.mxu1 %v1293_v36 }
  0x63   :  { %446 = vmatprep.subr.bf16.mxu1 %v1294_v37 }
  0x64   :  { %740 = vmatpush1.bf16.msra.mxu0 %v1330_v62 }
  0x65   :  { %741 = vmatprep.subr.bf16.mxu0 %v1335_v63 }
  0x66   :  { %447 = vmatpush1.bf16.msra.mxu1 %v1296_v38 }
  0x67   :  { %448 = vmatprep.subr.bf16.mxu1 %v1297_v39 }
  0x68   :  { %742 = vmatpush1.bf16.msra.mxu0 %v1333_v0 }
  0x69   :  { %743 = vmatprep.subr.bf16.mxu0 %v1338_v1 }
  0x6a   :  { %449 = vmatpush1.bf16.msra.mxu1 %v1299_v40 }
  0x6b   :  { %450 = vmatprep.subr.bf16.mxu1 %v1300_v41 }
  0x6c   :  { %744 = vmatpush1.bf16.msra.mxu0 %v1336_v2 }
  0x6d   :  { %745 = vmatprep.subr.bf16.mxu0 %v1341_v3 }
  0x6e   :  { %451 = vmatpush1.bf16.msra.mxu1 %v1302_v42 }
  0x6f   :  { %452 = vmatprep.subr.bf16.mxu1 %v1303_v43 }
  0x70   :  { %746 = vmatpush1.bf16.msra.mxu0 %v1339_v4 }
  0x71   :  { %747 = vmatprep.subr.bf16.mxu0 %v1344_v5 }
  0x72   :  { %453 = vmatpush1.bf16.msra.mxu1 %v1305_v44 }
  0x73   :  { %454 = vmatprep.subr.bf16.mxu1 %v1306_v45 }
  0x74   :  { %748 = vmatpush1.bf16.msra.mxu0 %v1342_v6 }
  0x75   :  { %749 = vmatprep.subr.bf16.mxu0 %v1347_v7 }
  0x76   :  { %455 = vmatpush1.bf16.msra.mxu1 %v1308_v46 }
  0x78   :  { %750 = vmatpush1.bf16.msra.mxu0 %v1345_v8 }
  0x79   :  { %751 = vmatprep.subr.bf16.mxu0 %v1350_v9 }
  0x7c   :  { %752 = vmatpush1.bf16.msra.mxu0 %v1348_v10  ;;  %v1353_v10 = vld [vmem:[#allocation4 + $0xe4] ss:$8 sps:$4 sm:$0xff]  }
  0x7d   :  { %753 = vmatprep.subr.bf16.mxu0 %v1353_v10 }
  0x80   :  { %754 = vmatpush1.bf16.msra.mxu0 %v1351_v11 }
  0x81   :  { %755 = vmatprep.subr.bf16.mxu0 %v1356_v12 }
  0x84   :  { %756 = vmatpush1.bf16.msra.mxu0 %v1354_v14 }
 0x10e   :  { %v157_v18 = vpop.f32.mrb[0].mxu0 }
 0x10f   :  { %v158_v19 = vadd.f32 %v157_v18, %v93_v16  ;;  %v159_v20 = vpop.f32.mrb[1].mxu0  ;;  %v1358_v18 = vld [vmem:[#allocation6] sm:$0xff]  }
 0x110   :  { %v160_v21 = vadd.f32 %v159_v20, %v97_v17  ;;  %v161_v22 = vpop.f32.mrb[2].mxu0  ;;  %v1361_v20 = vld [vmem:[#allocation6 + $0x50] sm:$0xff]  }
 0x111   :  { %v162_v23 = vadd.f32 %v161_v22, %v93_v16  ;;  %v163_v24 = vpop.f32.mrb[3].mxu0  ;;  %v196_v26 = vmax.f32 %v158_v19, 0.0  ;;  %v1360_v19 = vld [vmem:[#allocation6 + $0x8] sm:$0xff]   ;;  %v1363_v22 = vld [vmem:[#allocation6 + $0x58] sm:$0xff]  }
 0x112   :  { %v164_v25 = vadd.f32 %v163_v24, %v97_v17  ;;  %v197_v28 = vmax.f32 %v160_v21, 0.0  ;;  %v1362_v21 = vld [vmem:[#allocation6 + $0x10] sm:$0xff]   ;;  %v1589_v24 = vld [vmem:[#allocation6 + $0x60] sm:$0xff]  }
 0x113   :  { %v198_v27 = vmax.f32 %v162_v23, 0.0  ;;  %v1587_v23 = vld [vmem:[#allocation6 + $0x18] sm:$0xff]  }
 0x114   :  { %v199_v29 = vmax.f32 %v164_v25, 0.0  ;;  %v1593_v25 = vld [vmem:[#allocation6 + $0x20] sm:$0xff]  }
 0x115   :  { %v212_v30 = vpack.c.bf16 %v198_v27, %v196_v26  ;;  %v1595_v26 = vld [vmem:[#allocation6 + $0x68] sm:$0xff]   ;;  %v252_v27 = vld [vmem:[%s1642_s4] sm:$0x3] }
 0x116   :  { %v167_v31 = vpop.f32.mrb[4].mxu0  ;;  %v213_v32 = vpack.c.bf16 %v199_v29, %v197_v28  ;;  %v257_v28 = vrot.slane %v252_v27, %v1578_v13  ;;  %v1604_v29 = vrot.slane %v252_v27, %v1583_v15  ;;  %v1369_v27 = vld [vmem:[#allocation6 + $0x70] sm:$0xff]  }
 0x117   :  { %v168_v33 = vadd.f32 %v167_v31, %v93_v16  ;;  %v169_v34 = vpop.f32.mrb[5].mxu0 }
 0x118   :  { %v170_v35 = vadd.f32 %v169_v34, %v97_v17  ;;  %v171_v36 = vpop.f32.mrb[6].mxu0  ;;  %456 = vmatprep.mubr.bf16.mxu1 %v213_v32 }
 0x119   :  { %v172_v37 = vadd.f32 %v171_v36, %v93_v16  ;;  %v173_v38 = vpop.f32.mrb[7].mxu0  ;;  %457 = vmatmul.mubr.bf16.vlgmr.msra.gmra.mrb[0].mxu1 %v212_v30  ;;  %v200_v40 = vmax.f32 %v168_v33, 0.0 }
 0x11a   :  { %v174_v39 = vadd.f32 %v173_v38, %v97_v17  ;;  %v201_v42 = vmax.f32 %v170_v35, 0.0 }
 0x11b   :  { %v202_v41 = vmax.f32 %v172_v37, 0.0 }
 0x11c   :  { %v203_v43 = vmax.f32 %v174_v39, 0.0 }
 0x11d   :  { %v214_v44 = vpack.c.bf16 %v202_v41, %v200_v40 }
 0x11e   :  { %v215_v45 = vpack.c.bf16 %v203_v43, %v201_v42  ;;  %v177_v46 = vpop.f32.mrb[8].mxu0 }
 0x11f   :  { %v178_v47 = vadd.f32 %v177_v46, %v93_v16  ;;  %v179_v48 = vpop.f32.mrb[9].mxu0 }
 0x120   :  { %v180_v49 = vadd.f32 %v179_v48, %v97_v17  ;;  %v181_v50 = vpop.f32.mrb[10].mxu0  ;;  %466 = vmatprep.mubr.bf16.mxu1 %v215_v45 }
 0x121   :  { %v182_v51 = vadd.f32 %v181_v50, %v93_v16  ;;  %v183_v52 = vpop.f32.mrb[11].mxu0  ;;  %467 = vmatmul.mubr.bf16.gmra.mrb[4].mxu1 %v214_v44  ;;  %v204_v54 = vmax.f32 %v178_v47, 0.0 }
 0x122   :  { %v184_v53 = vadd.f32 %v183_v52, %v97_v17  ;;  %v205_v56 = vmax.f32 %v180_v49, 0.0 }
 0x123   :  { %v206_v55 = vmax.f32 %v182_v51, 0.0 }
 0x124   :  { %v207_v57 = vmax.f32 %v184_v53, 0.0 }
 0x125   :  { %v216_v58 = vpack.c.bf16 %v206_v55, %v204_v54 }
 0x126   :  { %v217_v59 = vpack.c.bf16 %v207_v57, %v205_v56  ;;  %v187_v60 = vpop.f32.mrb[12].mxu0 }
 0x127   :  { %v188_v61 = vadd.f32 %v187_v60, %v93_v16  ;;  %v189_v62 = vpop.f32.mrb[13].mxu0 }
 0x128   :  { %v190_v63 = vadd.f32 %v189_v62, %v97_v17  ;;  %v191_v0 = vpop.f32.mrb[14].mxu0  ;;  %476 = vmatprep.mubr.bf16.mxu1 %v217_v59 }
 0x129   :  { %v192_v1 = vadd.f32 %v191_v0, %v93_v16  ;;  %v193_v2 = vpop.f32.mrb[15].mxu0  ;;  %477 = vmatmul.mubr.bf16.gmra.mrb[8].mxu1 %v216_v58  ;;  %v208_v4 = vmax.f32 %v188_v61, 0.0  ;;  %v1357_v16 = vld [vmem:[#allocation6 + $0x40] sm:$0xff]  }
 0x12a   :  { %v194_v3 = vadd.f32 %v193_v2, %v97_v17  ;;  %v209_v6 = vmax.f32 %v190_v63, 0.0  ;;  %1194 = vmatprep.subr.bf16.mxu0 %v1357_v16  ;;  %v1359_v17 = vld [vmem:[#allocation6 + $0x48] sm:$0xff]   ;;  %1234 = vmatprep.subr.bf16.mxu1 %v1357_v16 }
 0x12b   :  { %v210_v5 = vmax.f32 %v192_v1, 0.0  ;;  %1242 = vmatpush3.bf16.msra.mxu1 %v1358_v18 }
 0x12c   :  { %v211_v7 = vmax.f32 %v194_v3, 0.0  ;;  %1235 = vmatprep.subr.bf16.mxu1 %v1359_v17 }
 0x12d   :  { %v218_v8 = vpack.c.bf16 %v210_v5, %v208_v4 }
 0x12e   :  { %v219_v9 = vpack.c.bf16 %v211_v7, %v209_v6 }
 0x12f   :  { %1243 = vmatpush3.bf16.msra.mxu1 %v1360_v19 }
 0x130   :  { %486 = vmatprep.mubr.bf16.mxu1 %v219_v9  ;;  %1236 = vmatprep.subr.bf16.mxu1 %v1361_v20 }
 0x131   :  { %487 = vmatmul.mubr.bf16.gmra.mrb[12].mxu1 %v218_v8 }
 0x133   :  { %1244 = vmatpush3.bf16.msra.mxu1 %v1362_v21 }
 0x134   :  { %1237 = vmatprep.subr.bf16.mxu1 %v1363_v22 }
 0x137   :  { %1245 = vmatpush3.bf16.msra.mxu1 %v1587_v23 }
 0x138   :  { %1238 = vmatprep.subr.bf16.mxu1 %v1589_v24 }
 0x13b   :  { %1246 = vmatpush3.bf16.msra.mxu1 %v1593_v25 }
 0x13c   :  { %1239 = vmatprep.subr.bf16.mxu1 %v1595_v26 }
 0x1ec   :  { %v458_v30 = vpop.f32.mrb[0].mxu1 }
 0x1ed   :  { %v459_v31 = vadd.f32 %v458_v30, %v257_v28  ;;  %v460_v32 = vpop.f32.mrb[1].mxu1 }
 0x1ee   :  { %v461_v33 = vadd.f32 %v460_v32, %v1604_v29  ;;  %v462_v34 = vpop.f32.mrb[2].mxu1 }
 0x1ef   :  { %v463_v35 = vadd.f32 %v462_v34, %v257_v28  ;;  %v464_v36 = vpop.f32.mrb[3].mxu1  ;;  %v497_v38 = vmax.f32 %v459_v31, 0.0 }
 0x1f0   :  { %v465_v37 = vadd.f32 %v464_v36, %v1604_v29  ;;  %v498_v40 = vmax.f32 %v461_v33, 0.0 }
 0x1f1   :  { %v499_v39 = vmax.f32 %v463_v35, 0.0 }
 0x1f2   :  { %v500_v41 = vmax.f32 %v465_v37, 0.0 }
 0x1f3   :  { %v513_v42 = vpack.c.bf16 %v499_v39, %v497_v38 }
 0x1f4   :  { %v514_v43 = vpack.c.bf16 %v500_v41, %v498_v40  ;;  %v468_v44 = vpop.f32.mrb[4].mxu1 }
 0x1f5   :  { %v469_v45 = vadd.f32 %v468_v44, %v257_v28  ;;  %v470_v46 = vpop.f32.mrb[5].mxu1 }
 0x1f6   :  { %v471_v47 = vadd.f32 %v470_v46, %v1604_v29  ;;  %v472_v48 = vpop.f32.mrb[6].mxu1  ;;  %757 = vmatprep.mubr.bf16.mxu0 %v514_v43 }
 0x1f7   :  { %v473_v49 = vadd.f32 %v472_v48, %v257_v28  ;;  %v474_v50 = vpop.f32.mrb[7].mxu1  ;;  %758 = vmatmul.mubr.bf16.vlgmr.msra.gmra.mrb[16].mxu0 %v513_v42  ;;  %v501_v52 = vmax.f32 %v469_v45, 0.0 }
 0x1f8   :  { %v475_v51 = vadd.f32 %v474_v50, %v1604_v29  ;;  %1195 = vmatpush3.bf16.msra.mxu0 %v1358_v18  ;;  %v502_v54 = vmax.f32 %v471_v47, 0.0 }
 0x1f9   :  { %v503_v53 = vmax.f32 %v473_v49, 0.0  ;;  %1196 = vmatprep.subr.bf16.mxu0 %v1359_v17 }
 0x1fa   :  { %v504_v55 = vmax.f32 %v475_v51, 0.0 }
 0x1fb   :  { %v515_v56 = vpack.c.bf16 %v503_v53, %v501_v52 }
 0x1fc   :  { %v516_v57 = vpack.c.bf16 %v504_v55, %v502_v54  ;;  %v478_v58 = vpop.f32.mrb[8].mxu1  ;;  %1197 = vmatpush3.bf16.msra.mxu0 %v1360_v19 }
 0x1fd   :  { %v479_v59 = vadd.f32 %v478_v58, %v257_v28  ;;  %v480_v60 = vpop.f32.mrb[9].mxu1  ;;  %1198 = vmatprep.subr.bf16.mxu0 %v1361_v20 }
 0x1fe   :  { %v481_v61 = vadd.f32 %v480_v60, %v1604_v29  ;;  %v482_v62 = vpop.f32.mrb[10].mxu1  ;;  %767 = vmatprep.mubr.bf16.mxu0 %v516_v57 }
 0x1ff   :  { %v483_v63 = vadd.f32 %v482_v62, %v257_v28  ;;  %v484_v0 = vpop.f32.mrb[11].mxu1  ;;  %768 = vmatmul.mubr.bf16.gmra.mrb[20].mxu0 %v515_v56  ;;  %v505_v2 = vmax.f32 %v479_v59, 0.0 }
 0x200   :  { %v485_v1 = vadd.f32 %v484_v0, %v1604_v29  ;;  %1199 = vmatpush3.bf16.msra.mxu0 %v1362_v21  ;;  %v506_v4 = vmax.f32 %v481_v61, 0.0 }
 0x201   :  { %v507_v3 = vmax.f32 %v483_v63, 0.0  ;;  %1200 = vmatprep.subr.bf16.mxu0 %v1363_v22 }
 0x202   :  { %v508_v5 = vmax.f32 %v485_v1, 0.0 }
 0x203   :  { %v517_v6 = vpack.c.bf16 %v507_v3, %v505_v2 }
 0x204   :  { %v518_v7 = vpack.c.bf16 %v508_v5, %v506_v4  ;;  %v488_v8 = vpop.f32.mrb[12].mxu1  ;;  %1201 = vmatpush3.bf16.msra.mxu0 %v1587_v23 }
 0x205   :  { %v489_v9 = vadd.f32 %v488_v8, %v257_v28  ;;  %v490_v10 = vpop.f32.mrb[13].mxu1  ;;  %1202 = vmatprep.subr.bf16.mxu0 %v1589_v24  ;;  %v1368_v24 = vld [vmem:[#allocation6 + $0x28] sm:$0xff]  }
 0x206   :  { %v491_v11 = vadd.f32 %v490_v10, %v1604_v29  ;;  %v492_v12 = vpop.f32.mrb[14].mxu1  ;;  %777 = vmatprep.mubr.bf16.mxu0 %v518_v7  ;;  %1247 = vmatpush3.bf16.msra.mxu1 %v1368_v24 }
 0x207   :  { %v493_v14 = vadd.f32 %v492_v12, %v257_v28  ;;  %v494_v16 = vpop.f32.mrb[15].mxu1  ;;  %778 = vmatmul.mubr.bf16.gmra.mrb[24].mxu0 %v517_v6  ;;  %v509_v17 = vmax.f32 %v489_v9, 0.0  ;;  %v1370_v28 = vld [vmem:[#allocation6 + $0x30] sm:$0xff]   ;;  %1240 = vmatprep.subr.bf16.mxu1 %v1369_v27 }
 0x208   :  { %v495_v18 = vadd.f32 %v494_v16, %v1604_v29  ;;  %1203 = vmatpush3.bf16.msra.mxu0 %v1593_v25  ;;  %v510_v20 = vmax.f32 %v491_v11, 0.0  ;;  %v1371_v25 = vld [vmem:[#allocation6 + $0x78] sm:$0xff]  }
 0x209   :  { %v511_v19 = vmax.f32 %v493_v14, 0.0  ;;  %1204 = vmatprep.subr.bf16.mxu0 %v1595_v26  ;;  %v1372_v29 = vld [vmem:[#allocation6 + $0x38] sm:$0xff]   ;;  %v553_v26 = vld [vmem:[%s1644_s6] sm:$0x3] }
 0x20a   :  { %v512_v21 = vmax.f32 %v495_v18, 0.0  ;;  %1248 = vmatpush3.bf16.msra.mxu1 %v1370_v28  ;;  %v558_v30 = vrot.slane %v553_v26, %v1578_v13  ;;  %v562_v31 = vrot.slane %v553_v26, %v1583_v15 }
 0x20b   :  { %v519_v22 = vpack.c.bf16 %v511_v19, %v509_v17  ;;  %1241 = vmatprep.subr.bf16.mxu1 %v1371_v25 }
 0x20c   :  { %v520_v23 = vpack.c.bf16 %v512_v21, %v510_v20  ;;  %1205 = vmatpush3.bf16.msra.mxu0 %v1368_v24 }
 0x20d   :  { %1206 = vmatprep.subr.bf16.mxu0 %v1369_v27 }
 0x20e   :  { %787 = vmatprep.mubr.bf16.mxu0 %v520_v23  ;;  %1249 = vmatpush3.bf16.msra.mxu1 %v1372_v29 }
 0x20f   :  { %788 = vmatmul.mubr.bf16.gmra.mrb[28].mxu0 %v519_v22 }
 0x210   :  { %1207 = vmatpush3.bf16.msra.mxu0 %v1370_v28 }
 0x211   :  { %1208 = vmatprep.subr.bf16.mxu0 %v1371_v25 }
 0x214   :  { %1209 = vmatpush3.bf16.msra.mxu0 %v1372_v29  ;;  %v1138_v29 = vld [vmem:[%s1646_s8] ss:$0 sm:$0xff] }
 0x2ca   :  { %v759_v32 = vpop.f32.mrb[16].mxu0 }
 0x2cb   :  { %v760_v33 = vadd.f32 %v759_v32, %v558_v30  ;;  %v761_v34 = vpop.f32.mrb[17].mxu0 }
 0x2cc   :  { %v762_v35 = vadd.f32 %v761_v34, %v562_v31  ;;  %v763_v36 = vpop.f32.mrb[18].mxu0 }
 0x2cd   :  { %v764_v37 = vadd.f32 %v763_v36, %v558_v30  ;;  %v765_v38 = vpop.f32.mrb[19].mxu0  ;;  %v798_v40 = vmax.f32 %v760_v33, 0.0 }
 0x2ce   :  { %v766_v39 = vadd.f32 %v765_v38, %v562_v31  ;;  %v799_v42 = vmax.f32 %v762_v35, 0.0 }
 0x2cf   :  { %v800_v41 = vmax.f32 %v764_v37, 0.0 }
 0x2d0   :  { %v801_v43 = vmax.f32 %v766_v39, 0.0 }
 0x2d1   :  { %v814_v44 = vpack.c.bf16 %v800_v41, %v798_v40 }
 0x2d2   :  { %v815_v45 = vpack.c.bf16 %v801_v43, %v799_v42  ;;  %v769_v46 = vpop.f32.mrb[20].mxu0 }
 0x2d3   :  { %v770_v47 = vadd.f32 %v769_v46, %v558_v30  ;;  %v771_v48 = vpop.f32.mrb[21].mxu0 }
 0x2d4   :  { %v772_v13 = vadd.f32 %v771_v48, %v562_v31  ;;  %v773_v49 = vpop.f32.mrb[22].mxu0  ;;  %989 = vmatprep.mubr.bf16.mxu0 %v815_v45 }
 0x2d5   :  { %v774_v15 = vadd.f32 %v773_v49, %v558_v30  ;;  %v775_v50 = vpop.f32.mrb[23].mxu0  ;;  %990 = vmatmul.mubr.bf16.vlgmr.msra.gmra.mrb[32].mxu0 %v814_v44  ;;  %v802_v52 = vmax.f32 %v770_v47, 0.0 }
 0x2d6   :  { %v776_v51 = vadd.f32 %v775_v50, %v562_v31  ;;  %v803_v54 = vmax.f32 %v772_v13, 0.0 }
 0x2d7   :  { %v804_v53 = vmax.f32 %v774_v15, 0.0 }
 0x2d8   :  { %v805_v55 = vmax.f32 %v776_v51, 0.0 }
 0x2d9   :  { %v816_v56 = vpack.c.bf16 %v804_v53, %v802_v52 }
 0x2da   :  { %v817_v57 = vpack.c.bf16 %v805_v55, %v803_v54  ;;  %v779_v58 = vpop.f32.mrb[24].mxu0 }
 0x2db   :  { %v780_v59 = vadd.f32 %v779_v58, %v558_v30  ;;  %v781_v60 = vpop.f32.mrb[25].mxu0 }
 0x2dc   :  { %v782_v61 = vadd.f32 %v781_v60, %v562_v31  ;;  %v783_v62 = vpop.f32.mrb[26].mxu0  ;;  %997 = vmatprep.mubr.bf16.mxu1 %v817_v57 }
 0x2dd   :  { %v784_v63 = vadd.f32 %v783_v62, %v558_v30  ;;  %v785_v0 = vpop.f32.mrb[27].mxu0  ;;  %998 = vmatmul.mubr.bf16.vlgmr.msra.gmra.mrb[16].mxu1 %v816_v56  ;;  %v806_v2 = vmax.f32 %v780_v59, 0.0 }
 0x2de   :  { %v786_v1 = vadd.f32 %v785_v0, %v562_v31  ;;  %v807_v4 = vmax.f32 %v782_v61, 0.0 }
 0x2df   :  { %v808_v3 = vmax.f32 %v784_v63, 0.0 }
 0x2e0   :  { %v809_v5 = vmax.f32 %v786_v1, 0.0 }
 0x2e1   :  { %v818_v6 = vpack.c.bf16 %v808_v3, %v806_v2 }
 0x2e2   :  { %v819_v7 = vpack.c.bf16 %v809_v5, %v807_v4  ;;  %v789_v8 = vpop.f32.mrb[28].mxu0 }
 0x2e3   :  { %v790_v9 = vadd.f32 %v789_v8, %v558_v30  ;;  %v791_v10 = vpop.f32.mrb[29].mxu0 }
 0x2e4   :  { %v792_v11 = vadd.f32 %v791_v10, %v562_v31  ;;  %v793_v12 = vpop.f32.mrb[30].mxu0  ;;  %1005 = vmatprep.mubr.bf16.mxu1 %v819_v7 }
 0x2e5   :  { %v794_v14 = vadd.f32 %v793_v12, %v558_v30  ;;  %v795_v16 = vpop.f32.mrb[31].mxu0  ;;  %1006 = vmatmul.mubr.bf16.gmra.mrb[20].mxu1 %v818_v6  ;;  %v810_v17 = vmax.f32 %v790_v9, 0.0 }
 0x2e6   :  { %v796_v18 = vadd.f32 %v795_v16, %v562_v31  ;;  %v811_v20 = vmax.f32 %v792_v11, 0.0 }
 0x2e7   :  { %v812_v19 = vmax.f32 %v794_v14, 0.0 }
 0x2e8   :  { %v813_v21 = vmax.f32 %v796_v18, 0.0 }
 0x2e9   :  { %v820_v22 = vpack.c.bf16 %v812_v19, %v810_v17 }
 0x2ea   :  { %v821_v23 = vpack.c.bf16 %v813_v21, %v811_v20 }
 0x2ec   :  { %1013 = vmatprep.mubr.bf16.mxu1 %v821_v23 }
 0x2ed   :  { %1014 = vmatmul.mubr.bf16.gmra.mrb[24].mxu1 %v820_v22 }
 0x3a8   :  { %v1210_v24 = vpop.f32.mrb[32].mxu0 }
 0x3a9   :  { %v1211_v27 = vpop.f32.mrb[33].mxu0 }
 0x3aa   :  { %v1212_v28 = vadd.f32 %v1211_v27, %v1210_v24  ;;  %v1213_v25 = vpop.f32.mrb[34].mxu0 }
 0x3ab   :  { %v1214_v26 = vpop.f32.mrb[35].mxu0 }
 0x3ac   :  { %v1215_v30 = vadd.f32 %v1214_v26, %v1213_v25  ;;  %v992_v32 = vadd.f32 %v1212_v28, %v1138_v29 }
 0x3ae   :  { %v995_v31 = vadd.f32 %v1215_v30, %v1138_v29 }
 0x3b0   :  { %v1174_v33 = vpack.c.bf16 %v995_v31, %v992_v32  ;;  %v1216_v34 = vpop.f32.mrb[16].mxu1 }
 0x3b1   :  { %v1217_v35 = vpop.f32.mrb[17].mxu1 }
 0x3b2   :  { %1175 = vst [vmem:[%s1647_s9] sm:$0xff] %v1174_v33   ;;  %v1218_v36 = vadd.f32 %v1217_v35, %v1216_v34  ;;  %v1219_v37 = vpop.f32.mrb[18].mxu1 }
 0x3b3   :  { %v1220_v38 = vpop.f32.mrb[19].mxu1 }
 0x3b4   :  { %v1221_v39 = vadd.f32 %v1220_v38, %v1219_v37  ;;  %v1000_v40 = vadd.f32 %v1218_v36, %v1138_v29 }
 0x3b6   :  { %v1003_v41 = vadd.f32 %v1221_v39, %v1138_v29 }
 0x3b8   :  { %v1179_v42 = vpack.c.bf16 %v1003_v41, %v1000_v40  ;;  %v1222_v43 = vpop.f32.mrb[20].mxu1 }
 0x3b9   :  { %v1223_v44 = vpop.f32.mrb[21].mxu1 }
 0x3ba   :  { %1191 = vst [vmem:[%s1647_s9 + $0x8] sm:$0xff] %v1179_v42   ;;  %v1224_v45 = vadd.f32 %v1223_v44, %v1222_v43  ;;  %v1225_v46 = vpop.f32.mrb[22].mxu1 }
 0x3bb   :  { %v1226_v47 = vpop.f32.mrb[23].mxu1 }
 0x3bc   :  { %v1227_v48 = vadd.f32 %v1226_v47, %v1225_v46  ;;  %v1008_v13 = vadd.f32 %v1224_v45, %v1138_v29 }
 0x3be   :  { %v1011_v49 = vadd.f32 %v1227_v48, %v1138_v29 }
 0x3c0   :  { %v1184_v15 = vpack.c.bf16 %v1011_v49, %v1008_v13  ;;  %v1228_v50 = vpop.f32.mrb[24].mxu1 }
 0x3c1   :  { %v1229_v51 = vpop.f32.mrb[25].mxu1 }
 0x3c2   :  { %1192 = vst [vmem:[%s1647_s9 + $0x10] sm:$0xff] %v1184_v15   ;;  %v1230_v52 = vadd.f32 %v1229_v51, %v1228_v50  ;;  %v1231_v53 = vpop.f32.mrb[26].mxu1 }
 0x3c3   :  { %v1232_v54 = vpop.f32.mrb[27].mxu1 }
 0x3c4   :  { %v1233_v55 = vadd.f32 %v1232_v54, %v1231_v53  ;;  %v1016_v56 = vadd.f32 %v1230_v52, %v1138_v29 }
 0x3c6   :  { %v1019_v57 = vadd.f32 %v1233_v55, %v1138_v29 }
 0x3c8   :  { %v1189_v58 = vpack.c.bf16 %v1019_v57, %v1016_v56 }
 0x3ca   :  { %1193 = vst [vmem:[%s1647_s9 + $0x18] sm:$0xff] %v1189_v58  }
 0x3cb   :  { %1066 = vsyncpa [#allocation3], 1 }
 0x3cc   :  { %1067 = vsyncpa [#allocation5], 1 }

</bundles_post_ra>
